<compile_context>
chip_gen: v6e
topology: v6e:2x2x1
jax: 0.10.0
libtpu: 0.0.40
codegen_flags: <defaults>
</compile_context>

<pallas_src>
import jax
import jax.numpy as jnp
from jax.experimental import pallas as pl
from jax.experimental.pallas import tpu as pltpu


def odefunc_kernel(x_ref, w1_ref, b1_ref, w2_ref, b2_ref, g_ref, be_ref, o_ref):
    feat = o_ref.shape[-1]
    inv_f = jnp.float32(1.0 / feat)

    # Single read of the row tile; compute in f32 regardless of I/O dtype.
    x = x_ref[...].astype(jnp.float32)

    # Linear 1 + SiLU  (weights pre-transposed to (F_in, F_out))
    h = jnp.dot(x, w1_ref[...].astype(jnp.float32),
                preferred_element_type=jnp.float32) + b1_ref[...]
    h = h * jax.nn.sigmoid(h)          # SiLU; sigmoid runs on the EUP slot

    # Dropout: identity in eval mode.

    # Linear 2
    h = jnp.dot(h, w2_ref[...].astype(jnp.float32),
                preferred_element_type=jnp.float32) + b2_ref[...]

    # LayerNorm over last dim (eps=1e-5, biased variance), one-pass statistics.
    s1 = jnp.sum(h, axis=-1, keepdims=True)
    s2 = jnp.sum(h * h, axis=-1, keepdims=True)
    mean = s1 * inv_f
    var = s2 * inv_f - mean * mean
    rstd = jax.lax.rsqrt(var + 1e-5)

    # Time factor pre-folded into the affine: g_eff = gamma*tf, b_eff = beta*tf.
    o_ref[...] = ((h - mean) * rstd * g_ref[...] + be_ref[...] + x).astype(o_ref.dtype)


def _round_up(a, b):
    return ((a + b - 1) // b) * b


def odefunc_forward(t, x, params, *, tm_target=2048):
    """x: (B, S, F). t: python/JAX scalar. Returns (B, S, F) with x.dtype."""
    B, S, F = x.shape
    N = B * S
    x2 = x.reshape(N, F)                      # contiguous -> free reshape, no copy

    io_itemsize = jnp.dtype(x.dtype).itemsize
    w_itemsize = jnp.dtype(params["w1T"].dtype).itemsize

    # --- Row-tile selection ------------------------------------------------
    # (a) big tile to amortize per-grid-step overhead,
    # (b) keep >= 2 blocks so v7x's two TensorCores both get work,
    # (c) keep double-buffered in+out under ~12 MiB (v5e scoped-VMEM friendly).
    vmem_io_budget = 12 << 20
    tm_vmem_cap = max(8, (vmem_io_budget // (4 * F * io_itemsize)) // 8 * 8)
    tm = max(8, min(tm_target, tm_vmem_cap, _round_up(pl.cdiv(N, 2), 8)))
    n_blocks = pl.cdiv(N, tm)                 # ragged tail handled by masked edge block

    # --- Time factor folded into LayerNorm affine (identical for every row) -
    t32 = jnp.asarray(t, jnp.float32)
    tf = jax.nn.sigmoid(t32 * params["wt"] + params["bt"])          # (1, F)
    g_eff = (params["gamma"] * tf).astype(jnp.float32)
    b_eff = (params["beta"] * tf).astype(jnp.float32)

    row_spec = pl.BlockSpec((tm, F), lambda i: (i, 0))
    mat_spec = pl.BlockSpec((F, F), lambda i: (0, 0))
    vec_spec = pl.BlockSpec((1, F), lambda i: (0, 0))

    cost = pl.CostEstimate(
        flops=4 * N * F * F + 10 * N * F,                 # 2 matmuls + VPU epilogue
        transcendentals=N * F + N,                        # sigmoid (SiLU) + rsqrt/row
        bytes_accessed=2 * N * F * io_itemsize + 2 * F * F * w_itemsize + 4 * F * 4,
    )

    vmem_need = (4 * tm * F * io_itemsize                         # 2-buffered in + out
                 + 2 * (2 * F * F * w_itemsize + 4 * F * 4)       # weights / vectors
                 + (2 << 20))                                     # headroom
    vmem_limit = int(min(max(vmem_need, 16 << 20), 48 << 20))     # <= v7x 64 MiB phys

    out = pl.pallas_call(
        odefunc_kernel,
        out_shape=jax.ShapeDtypeStruct((N, F), x.dtype),
        grid=(n_blocks,),
        in_specs=[
            row_spec,                # x rows
            mat_spec, vec_spec,      # W1^T, b1
            mat_spec, vec_spec,      # W2^T, b2
            vec_spec, vec_spec,      # g_eff, b_eff  (gamma*tf, beta*tf)
        ],
        out_specs=row_spec,
        compiler_params=pltpu.CompilerParams(
            dimension_semantics=("parallel",),
            vmem_limit_bytes=vmem_limit),
        cost_estimate=cost,
    )(x2,
      params["w1T"], params["b1"],
      params["w2T"], params["b2"],
      g_eff, b_eff)

    return out.reshape(B, S, F)


def init_params(filters, key):
    """Deterministic init mimicking PyTorch nn.Linear / nn.LayerNorm defaults."""
    ks = jax.random.split(key, 6)
    bound = 1.0 / (filters ** 0.5)

    def unif(k, shape, b):
        return jax.random.uniform(k, shape, jnp.float32, minval=-b, maxval=b)

    # nn.Linear(filters, filters): weight (F_out, F_in); stored transposed (F_in, F_out).
    w1 = unif(ks[0], (filters, filters), bound)
    b1 = unif(ks[1], (1, filters), bound)
    w2 = unif(ks[2], (filters, filters), bound)
    b2 = unif(ks[3], (1, filters), bound)
    # nn.Linear(1, filters): weight (F,1) kept as (1,F) row; bound = 1/sqrt(1).
    wt = unif(ks[4], (1, filters), 1.0)
    bt = unif(ks[5], (1, filters), 1.0)
    gamma = jnp.ones((1, filters), jnp.float32)
    beta = jnp.zeros((1, filters), jnp.float32)

    return {"w1T": w1.T, "b1": b1,
            "w2T": w2.T, "b2": b2,
            "gamma": gamma, "beta": beta, "wt": wt, "bt": bt}


def odefunc_reference(t, x, p):
    """Pure-JAX f32 reference (same weights, two-pass LayerNorm)."""
    w1 = p["w1T"].astype(jnp.float32)
    w2 = p["w2T"].astype(jnp.float32)
    h = x @ w1 + p["b1"]
    h = h * jax.nn.sigmoid(h)
    h = h @ w2 + p["b2"]
    mean = jnp.mean(h, axis=-1, keepdims=True)
    var = jnp.mean((h - mean) ** 2, axis=-1, keepdims=True)
    h = (h - mean) / jnp.sqrt(var + 1e-5)
    h = h * p["gamma"] + p["beta"]
    tf = jax.nn.sigmoid(t * p["wt"] + p["bt"])     # (1, F) broadcast over B, S
    return h * tf[None] + x


if __name__ == "__main__":
    # filters = 128 (lane-aligned); S chosen so N = 24 is NOT a multiple of the
    # row tile -> exercises the pad-free ragged edge-block path.
    B, S, F = 2, 12, 128
    key = jax.random.PRNGKey(0)
    kx, kp = jax.random.split(key)
    x = jax.random.normal(kx, (B, S, F), jnp.float32)
    params = init_params(F, kp)
    t = 0.37

    out = jax.block_until_ready(odefunc_forward(t, x, params))
    ref = odefunc_reference(jnp.float32(t), x, params)

    assert out.shape == (B, S, F)
    assert bool(jnp.isfinite(out).all())
    # f32 matmuls -> tight agreement with the f32 reference.
    err = float(jnp.max(jnp.abs(out - ref)))
    assert jnp.allclose(out, ref, atol=1e-3, rtol=1e-3), err
    print("KERNEL_OK")
</pallas_src>

<mosaic_0001>
module attributes {stable_mosaic.version = 11 : i64} {
  func.func @odefunc_kernel(%arg0: i32, %arg1: memref<16x128xf32, #tpu.memory_space<vmem>>, %arg2: memref<128x128xf32, #tpu.memory_space<vmem>>, %arg3: memref<1x128xf32, #tpu.memory_space<vmem>>, %arg4: memref<128x128xf32, #tpu.memory_space<vmem>>, %arg5: memref<1x128xf32, #tpu.memory_space<vmem>>, %arg6: memref<1x128xf32, #tpu.memory_space<vmem>>, %arg7: memref<1x128xf32, #tpu.memory_space<vmem>>, %arg8: memref<16x128xf32, #tpu.memory_space<vmem>>) attributes {dimension_semantics = [#tpu.dimension_semantics<parallel>], iteration_bounds = array<i64: 2>, scalar_prefetch = 0 : i64, scratch_operands = 0 : i64, tpu.core_type = #tpu.core_type<tc>, window_params = [{transform_indices = @transform_0, window_bounds = array<i64: 16, 128>}, {pipeline_mode = #tpu.pipeline_mode<synchronous>, transform_indices = @transform_1, window_bounds = array<i64: 128, 128>}, {pipeline_mode = #tpu.pipeline_mode<synchronous>, transform_indices = @transform_2, window_bounds = array<i64: 1, 128>}, {pipeline_mode = #tpu.pipeline_mode<synchronous>, transform_indices = @transform_3, window_bounds = array<i64: 128, 128>}, {pipeline_mode = #tpu.pipeline_mode<synchronous>, transform_indices = @transform_4, window_bounds = array<i64: 1, 128>}, {pipeline_mode = #tpu.pipeline_mode<synchronous>, transform_indices = @transform_5, window_bounds = array<i64: 1, 128>}, {pipeline_mode = #tpu.pipeline_mode<synchronous>, transform_indices = @transform_6, window_bounds = array<i64: 1, 128>}, {transform_indices = @transform_7, window_bounds = array<i64: 16, 128>}]} {
    %c0 = arith.constant 0 : index
    %c0_0 = arith.constant 0 : index
    %0 = vector.load %arg1[%c0, %c0_0] : memref<16x128xf32, #tpu.memory_space<vmem>>, vector<16x128xf32>
    %c0_1 = arith.constant 0 : index
    %c0_2 = arith.constant 0 : index
    %1 = vector.load %arg2[%c0_1, %c0_2] : memref<128x128xf32, #tpu.memory_space<vmem>>, vector<128x128xf32>
    %cst = arith.constant dense<0.000000e+00> : vector<16x128xf32>
    %2 = tpu.matmul %0, %1, %cst {dimension_numbers = #tpu.dot_dimension_numbers<[1], [0], [0], [1], [0, 0, 1, 1], [], []>} : vector<16x128xf32>, vector<128x128xf32>, vector<16x128xf32> -> vector<16x128xf32>
    %c0_3 = arith.constant 0 : index
    %c0_4 = arith.constant 0 : index
    %3 = vector.load %arg3[%c0_3, %c0_4] : memref<1x128xf32, #tpu.memory_space<vmem>>, vector<1x128xf32>
    %4 = vector.broadcast %3 : vector<1x128xf32> to vector<16x128xf32>
    %5 = arith.addf %2, %4 : vector<16x128xf32>
    %6 = arith.negf %5 : vector<16x128xf32>
    %7 = math.exp %6 : vector<16x128xf32>
    %cst_5 = arith.constant 1.000000e+00 : f32
    %8 = vector.broadcast %cst_5 : f32 to vector<16x128xf32>
    %9 = arith.addf %8, %7 : vector<16x128xf32>
    %10 = arith.divf %8, %9 : vector<16x128xf32>
    %11 = arith.mulf %5, %10 : vector<16x128xf32>
    %c0_6 = arith.constant 0 : index
    %c0_7 = arith.constant 0 : index
    %12 = vector.load %arg4[%c0_6, %c0_7] : memref<128x128xf32, #tpu.memory_space<vmem>>, vector<128x128xf32>
    %cst_8 = arith.constant dense<0.000000e+00> : vector<16x128xf32>
    %13 = tpu.matmul %11, %12, %cst_8 {dimension_numbers = #tpu.dot_dimension_numbers<[1], [0], [0], [1], [0, 0, 1, 1], [], []>} : vector<16x128xf32>, vector<128x128xf32>, vector<16x128xf32> -> vector<16x128xf32>
    %c0_9 = arith.constant 0 : index
    %c0_10 = arith.constant 0 : index
    %14 = vector.load %arg5[%c0_9, %c0_10] : memref<1x128xf32, #tpu.memory_space<vmem>>, vector<1x128xf32>
    %15 = vector.broadcast %14 : vector<1x128xf32> to vector<16x128xf32>
    %16 = arith.addf %13, %15 : vector<16x128xf32>
    %cst_11 = arith.constant dense<0.000000e+00> : vector<16xf32>
    %17 = vector.multi_reduction <add>, %16, %cst_11 [1] : vector<16x128xf32> to vector<16xf32>
    %18 = vector.shape_cast %17 : vector<16xf32> to vector<16x1xf32>
    %19 = arith.mulf %16, %16 : vector<16x128xf32>
    %cst_12 = arith.constant dense<0.000000e+00> : vector<16xf32>
    %20 = vector.multi_reduction <add>, %19, %cst_12 [1] : vector<16x128xf32> to vector<16xf32>
    %21 = vector.shape_cast %20 : vector<16xf32> to vector<16x1xf32>
    %cst_13 = arith.constant 7.812500e-03 : f32
    %22 = vector.broadcast %cst_13 : f32 to vector<16x1xf32>
    %23 = arith.mulf %18, %22 : vector<16x1xf32>
    %cst_14 = arith.constant 7.812500e-03 : f32
    %24 = vector.broadcast %cst_14 : f32 to vector<16x1xf32>
    %25 = arith.mulf %21, %24 : vector<16x1xf32>
    %26 = arith.mulf %23, %23 : vector<16x1xf32>
    %27 = arith.subf %25, %26 : vector<16x1xf32>
    %cst_15 = arith.constant 9.99999974E-6 : f32
    %28 = vector.broadcast %cst_15 : f32 to vector<16x1xf32>
    %29 = arith.addf %27, %28 : vector<16x1xf32>
    %30 = math.rsqrt %29 : vector<16x1xf32>
    %31 = vector.broadcast %23 : vector<16x1xf32> to vector<16x128xf32>
    %32 = arith.subf %16, %31 : vector<16x128xf32>
    %33 = vector.broadcast %30 : vector<16x1xf32> to vector<16x128xf32>
    %34 = arith.mulf %32, %33 : vector<16x128xf32>
    %c0_16 = arith.constant 0 : index
    %c0_17 = arith.constant 0 : index
    %35 = vector.load %arg6[%c0_16, %c0_17] : memref<1x128xf32, #tpu.memory_space<vmem>>, vector<1x128xf32>
    %36 = vector.broadcast %35 : vector<1x128xf32> to vector<16x128xf32>
    %37 = arith.mulf %34, %36 : vector<16x128xf32>
    %c0_18 = arith.constant 0 : index
    %c0_19 = arith.constant 0 : index
    %38 = vector.load %arg7[%c0_18, %c0_19] : memref<1x128xf32, #tpu.memory_space<vmem>>, vector<1x128xf32>
    %39 = vector.broadcast %38 : vector<1x128xf32> to vector<16x128xf32>
    %40 = arith.addf %37, %39 : vector<16x128xf32>
    %41 = arith.addf %40, %0 : vector<16x128xf32>
    %c0_20 = arith.constant 0 : index
    %c0_21 = arith.constant 0 : index
    %42 = vector.load %arg8[%c0_20, %c0_21] : memref<16x128xf32, #tpu.memory_space<vmem>>, vector<16x128xf32>
    tpu.vector_store %arg8[%c0_20, %c0_21], %41 {strides = array<i32>} : memref<16x128xf32, #tpu.memory_space<vmem>>, vector<16x128xf32>,
    return
  }
  func.func @transform_0(%arg0: i32) -> (i32, i32) {
    %c0_i32 = arith.constant 0 : i32
    %c0_i32_0 = arith.constant 0 : i32
    return %arg0, %c0_i32 : i32, i32
  }
  func.func @transform_1(%arg0: i32) -> (i32, i32) {
    %c0_i32 = arith.constant 0 : i32
    %c0_i32_0 = arith.constant 0 : i32
    %c0_i32_1 = arith.constant 0 : i32
    return %c0_i32, %c0_i32_0 : i32, i32
  }
  func.func @transform_2(%arg0: i32) -> (i32, i32) {
    %c0_i32 = arith.constant 0 : i32
    %c0_i32_0 = arith.constant 0 : i32
    %c0_i32_1 = arith.constant 0 : i32
    return %c0_i32, %c0_i32_0 : i32, i32
  }
  func.func @transform_3(%arg0: i32) -> (i32, i32) {
    %c0_i32 = arith.constant 0 : i32
    %c0_i32_0 = arith.constant 0 : i32
    %c0_i32_1 = arith.constant 0 : i32
    return %c0_i32, %c0_i32_0 : i32, i32
  }
  func.func @transform_4(%arg0: i32) -> (i32, i32) {
    %c0_i32 = arith.constant 0 : i32
    %c0_i32_0 = arith.constant 0 : i32
    %c0_i32_1 = arith.constant 0 : i32
    return %c0_i32, %c0_i32_0 : i32, i32
  }
  func.func @transform_5(%arg0: i32) -> (i32, i32) {
    %c0_i32 = arith.constant 0 : i32
    %c0_i32_0 = arith.constant 0 : i32
    %c0_i32_1 = arith.constant 0 : i32
    return %c0_i32, %c0_i32_0 : i32, i32
  }
  func.func @transform_6(%arg0: i32) -> (i32, i32) {
    %c0_i32 = arith.constant 0 : i32
    %c0_i32_0 = arith.constant 0 : i32
    %c0_i32_1 = arith.constant 0 : i32
    return %c0_i32, %c0_i32_0 : i32, i32
  }
  func.func @transform_7(%arg0: i32) -> (i32, i32) {
    %c0_i32 = arith.constant 0 : i32
    %c0_i32_0 = arith.constant 0 : i32
    return %arg0, %c0_i32 : i32, i32
  }
}

</mosaic_0001>

<bundles_post_ra>
// kernel: tpu_custom_call.1
= control target key start
LH: loop header
LB: loop body
LE: loop exit
PB: predicated region body
PF: predicated region fallthrough
CT: control target
= control target key end

     0   :  { %s1370_s0 = inlined_call_operand.hbm [shape: f32[24,128], index: 0, kind: input, shape index: {}]   ;;  %s1371_s1 = inlined_call_operand.hbm [shape: f32[128,128], index: 1, kind: input, shape index: {}]   ;;  %s1372_s2 = inlined_call_operand.vmem [shape: f32[1,128], index: 2, kind: input, shape index: {}]   ;;  %s1373_s3 = inlined_call_operand.hbm [shape: f32[128,128], index: 3, kind: input, shape index: {}]   ;;  %s1374_s4 = inlined_call_operand.vmem [shape: f32[1,128], index: 4, kind: input, shape index: {}]   ;;  %s1375_s5 = inlined_call_operand.vmem [shape: f32[1,128], index: 5, kind: input, shape index: {}]   ;;  %s1376_s6 = inlined_call_operand.vmem [shape: f32[1,128], index: 6, kind: input, shape index: {}]   ;;  %s1377_s7 = inlined_call_operand.hbm [shape: f32[24,128], index: 7, kind: output, shape index: {}]  }
   0x1   :  { %1380 = sst [smem:[#allocation12_spill]] %s1371_s1 }
   0x2   :  { %1381 = sst [smem:[#allocation13_spill]] %s1373_s3 }
   0x3   :  { %12 = vsyncpa [#allocation3], 0 }
   0x4   :  { %14 = vsyncpa [#allocation3 + $0x1], 0 }
   0x5   :  { %15 = vsyncpa [#allocation6], 0 }
   0x6   :  { %16 = vsyncpa [#allocation4], 0 }
   0x7   :  { %18 = vsyncpa [#allocation4 + $0x1], 0  ;;  %s1130_s24 = smov 0   ;;  %s1132_s25 = smov 0  }
   0x8   :  { %s1134_s26 = smov 0   ;;  %s1136_s27 = smov 0  }
   0x9 LB: > { %s1151_s28 = sadd.s32 4294967295, %s1078_s27   ;;  %s714_s29 = sadd.s32 4294967294, %s1078_s27   ;;  %s1078_s27 = sphi %s1136_s27, %s1398_s27   ;;  %s1074_s26 = sphi %s1134_s26, %s1397_s26   ;;  %s1070_s25 = sphi %s1132_s25, %s1396_s25   ;;  %s1066_s24 = sphi %s1130_s24, %s1395_s24  }
   0xa   : > { %s1155_s30 = sadd.s32 1, %s1078_s27   ;;  %s31_s8 = sadd.s32 1, %s1074_s26 }
   0xb   : > { %s28_s9 = ssub.s32 %s1078_s27, %s1155_s30  ;;  %p38_p0 = scmp.ne.s32.totalorder %s1074_s26, %s1070_s25 }
   0xc   : > { %p29_p1 = scmp.eq.s32.totalorder %s28_s9, 0  ;;  %p39_p2 = scmp.eq.s32.totalorder %s1078_s27, 0 }
   0xd   : > { %p44_p3 = scmp.ne.s32.totalorder %s1070_s25, %s1066_s24  ;;  %p1378_p4 = scmp.eq.s32.totalorder %s1151_s28, 0 }
   0xe   : > { %s1167_s10 = scalar_select %p29_p1, %s1074_s26, %s31_s8  }
   0xf   : > { %p1169_p5 = por %p39_p2, %p38_p0  ;;  %p1175_p6 = por %p1378_p4, %p44_p3 }
  0x10   : > { %p194_p7 = scmp.eq.s32.totalorder %s1151_s28, 1  ;;  %p200_p8 = scmp.eq.s32.totalorder %s714_s29, 1 }
  0x11   : > { %s1383_s12 = scalar_select %p1175_p6, 1, 0 }
  0x12   : > { %p715_p9 = scmp.ge.s32.totalorder %s1078_s27, 1  ;;  %p207_p10 = scmp.lt.s32.totalorder %s1078_s27, 3 }
  0x13   : > { %p1182_p11 = por %p194_p7, %p38_p0  ;;  %p1186_p12 = por %p200_p8, %p44_p3 }
  0x14   : > { %p1190_p13 = pnand %p715_p9, %p207_p10  ;;  %s1080_s16 = smov [#allocation5]  }
  0x15   : > { %s1384_s13 = scalar_select %p1182_p11, 1, 0 }
  0x16   : > { %s1385_s14 = scalar_select %p1186_p12, 1, 0 }
  0x17   : > { %p864_p1 = pneg %p1190_p13  ;;  %s219_s17 = sshll.u32 %s1080_s16, 4  ;;  %s220_s17 = int_to_ptr.vmem [resolvable:$true] %s219_s17 }
  0x18   : > { %s1081_s19 = smov [#allocation7]   ;;  %s943_s21 = scalar_lea.vmem %s220_s17, 2048 }
  0x19   : > { %p1198_p2 = pnand %p864_p1, %p1378_p4  ;;  %s235_s20 = sshll.u32 %s1081_s19, 4  ;;  %s236_s20 = int_to_ptr.vmem [resolvable:$true] %s235_s20 }
  0x1a   : > { %p944_p3 = scmp.ne.s32.totalorder %s220_s17, %s943_s21  ;;  %p951_p9 = scmp.lt.s32.totalorder %s220_s17, %s220_s17 }
  0x1b   : > { %p934_p0 = pneg %p1198_p2  ;;  %p952_p10 = scmp.lt.s32.totalorder %s943_s21, %s943_s21 }
  0x1d   : > { %p946_p7 = pnand %p944_p3, %p934_p0  ;;  %p953_p12 = por %p952_p10, %p951_p9 }
  0x1f   : > { %p947_p8 = pneg %p946_p7 }
  0x21   : > { %p954_p1 = pnand %p953_p12, %p947_p8 }
  0x23   : > { %957 = shalt.err (!%p954_p1)
}
  0x24   : > { %s1082_s22 = smov 128   ;;  %s1083_s23 = smov 8  }
  0x25   : > { %s1388_s1 = sld [smem:[#allocation12_spill]]  ;;  %s969_s9 = scalar_lea.vmem %s236_s20, 2048 }
  0x26   : > { %p970_p4 = scmp.ne.s32.totalorder %s236_s20, %s969_s9  ;;  %p977_p11 = scmp.lt.s32.totalorder %s236_s20, %s236_s20 }
  0x27   : > { %p978_p6 = scmp.lt.s32.totalorder %s969_s9, %s969_s9 }
  0x28   : > { %p972_p3 = pnand %p970_p4, %p934_p0 }
  0x29   : > { %p979_p9 = por %p978_p6, %p977_p11 }
  0x2a   : > { %p973_p7 = pneg %p972_p3 }
  0x2b   : > { %867 = dma.hbm_to_vmem [thread:$0]  (!%p1198_p2), %s1388_s1, 2048, %s220_s17, [#allocation6], %s1082_s22, %s1082_s22, %s1083_s23  }
  0x2c   : > { %p980_p12 = pnand %p979_p9, %p973_p7 }
  0x2e   : > { %983 = shalt.err (!%p980_p12)
}
  0x2f   : > { %s1389_s3 = sld [smem:[#allocation13_spill]]  ;;  %p718_p8 = scmp.ge.s32.totalorder %s1078_s27, 2 }
  0x31   : > { %254 = sbr.rel (%p718_p8) target bundleno = 86 (0x56), region = 40 }
  0x35   : > { %870 = dma.hbm_to_vmem [thread:$0]  (!%p1198_p2), %s1389_s3, 2048, %s236_s20, [#allocation6], %s1082_s22, %s1082_s22, %s1083_s23  }
  0x36   : > { %257 = sbr.rel (!%p1169_p5) target bundleno = 86 (0x56), region = 44  ;;  %s258_s17 = sand.u32 (%p1169_p5), 1, %s1074_s26  }
  0x37   : > { %s720_s21 = sshll.u32 (%p1169_p5), %s1078_s27, 1  ;;  %s719_s29 = sshll.u32 (%p1169_p5), %s258_s17, 4 }
  0x38   : > { %s264_s8 = ssub.s32 (%p1169_p5), 3, %s720_s21  ;;  %s1230_s22 = scalar_lea.sflag (%p1169_p5), [#allocation3], %s258_s17 }
  0x39   : > { %p265_p4 = scmp.lt.s32.totalorder (%p1169_p5), %s264_s8, 2  ;;  %s262_s23 = scalar_lea.vmem (%p1169_p5), [#allocation2], %s719_s29 }
  0x3b   : > { %s1400_s8 = smov (!%p265_p4, %s264_s8), 2 }
  0x3c   : > { %s1227_s18 = sshll.u32 %s1400_s8, 7 }
  0x3d   : > { %s269_s20 = ssub.s32 256, %s1227_s18 }
  0x3e   : > { %270 = vsyncadd %s1230_s22, %s269_s20  ;;  %p722_p5 = scmp.ne.s32.totalorder %s1227_s18, 0  ;;  %s746_s11 = sshll.u32 %s1078_s27, 8 }
  0x3f   : > { %s1238_s19 = scalar_lea.hbm %s1370_s0, %s746_s11  ;;  %s275_s21 = sshll.u32 %s262_s23, 4  ;;  %s1240_s21 = int_to_ptr.vmem [resolvable:$true] %s275_s21 }
  0x40   : > { %s984_s17 = scalar_lea.hbm %s1238_s19, %s1227_s18  ;;  %s988_s20 = scalar_lea.hbm %s1370_s0, 384 }
  0x41   : > { %p985_p6 = scmp.ne.s32.totalorder %s1238_s19, %s984_s17  ;;  %p989_p0 = scmp.lt.s32.totalorder %s1238_s19, %s1370_s0 }
  0x42   : > { %p990_p10 = scmp.lt.s32.totalorder %s988_s20, %s984_s17 }
  0x43   : > { %p986_p11 = pnand %p985_p6, %p722_p5 }
  0x44   : > { %p991_p1 = por %p990_p10, %p989_p0 }
  0x45   : > { %p987_p2 = pneg %p986_p11 }
  0x47   : > { %p992_p3 = pnand %p991_p1, %p987_p2 }
  0x49   : > { %995 = shalt.err (!%p992_p3)
}
  0x4a   : > { %s996_s23 = scalar_lea.vmem %s1240_s21, %s1227_s18  ;;  %s1084_s11 = smov [#allocation2]  }
  0x4b   : > { %p997_p7 = scmp.ne.s32.totalorder %s1240_s21, %s996_s23  ;;  %s1000_s9 = sshll.u32 %s1084_s11, 4  ;;  %s1001_s9 = int_to_ptr.vmem [resolvable:$false] %s1000_s9 }
  0x4c   : > { %s1002_s16 = scalar_lea.vmem %s1001_s9, 512  ;;  %p1003_p4 = scmp.lt.s32.totalorder %s1240_s21, %s1001_s9 }
  0x4d   : > { %p998_p9 = pnand %p997_p7, %p722_p5  ;;  %p1004_p6 = scmp.lt.s32.totalorder %s1002_s16, %s996_s23 }
  0x4f   : > { %p999_p12 = pneg %p998_p9  ;;  %p1005_p11 = por %p1004_p6, %p1003_p4 }
  0x51   : > { %p1006_p0 = pnand %p1005_p11, %p999_p12 }
  0x53   : > { %1009 = shalt.err (!%p1006_p0)
}
  0x54   : > { %s1085_s1 = smov 128   ;;  %s1086_s3 = smov 8  }
  0x55   : > { %281 = dma.hbm_to_vmem [thread:$0]  (%p722_p5), %s1238_s19, %s1227_s18, %s1240_s21, %s1230_s22, %s1085_s1, %s1085_s1, %s1086_s3  }
  0x56 PF: > { %287 = sbr.rel (%p1190_p13) target bundleno = 757 (0x2f5), region = 48  ;;  %s1269_s17 = sand.u32 (!%p1190_p13), 1, %s1070_s25  }
  0x57   : > { %s727_s29 = sshll.u32 (!%p1190_p13), %s1269_s17, 4  ;;  %s290_s8 = scalar_lea.sflag (!%p1190_p13), [#allocation3], %s1269_s17 }
  0x58   : > { %s1275_s20 = scalar_lea.vmem (!%p1190_p13), [#allocation2], %s727_s29  ;;  %p1390_p2 = scmp.ne.s32.totalorder (!%p1190_p13), %s1383_s12, 0 }
  0x5b   : > { %1053 = dma.done.wait (%p1390_p2), %s290_s8, 256  }
  0x5c   : > { %1055 = vsyncadd (%p1390_p2), %s290_s8, 4294967040  ;;  %p1391_p5 = scmp.eq.s32.totalorder %s1151_s28, 0 }
  0x5e   : > { %1057 = dma.done.wait (%p1391_p5), [#allocation6], 4096   ;;  %p1392_p13 = pmov %p1391_p5 }
  0x5f   : > { %v359_v0 = vld [vmem:[#allocation5 + $0x78] sm:$0xff]  ;;  %v358_v1 = vld [vmem:[#allocation5 + $0x70] sm:$0xff]  ;;  %v357_v2 = vld [vmem:[#allocation5 + $0x68] sm:$0xff]  ;;  %s331_s9 = scalar_lea.vmem [#allocation8], %s727_s29  ;;  %s603_s16 = scalar_lea.sflag [#allocation4], %s1269_s17 }
  0x60   : > { %1059 = vsyncadd (%p1392_p13), [#allocation6], 4294963200  ;;  %784 = vmatprep.subr.mxu0 %v359_v0  ;;  %v356_v3 = vld [vmem:[#allocation5 + $0x60] sm:$0xff]  ;;  %v355_v5 = vld [vmem:[#allocation5 + $0x58] sm:$0xff]  ;;  %p1393_p10 = scmp.ne.s32.totalorder %s1384_s13, 0 }
  0x61   : > { %785 = vmatpush3.msra.mxu0 %v359_v0  ;;  %v1286_v4 = vld [vmem:[%s1275_s20] sm:$0xff]  ;;  %v353_v7 = vld [vmem:[#allocation5 + $0x48] sm:$0xff]  ;;  %v351_v9 = vld [vmem:[#allocation5 + $0x38] sm:$0xff]  ;;  %s738_s1 = sshll.u32 (%p1393_p10), %s1151_s28, 1 }
  0x62   : > { %786 = vmatprep.subr.mxu0 %v358_v1  ;;  %816 = vmatprep.mubr.f32.mxu0 %v1286_v4  ;;  %v354_v6 = vld [vmem:[#allocation5 + $0x50] sm:$0xff]  ;;  %v352_v8 = vld [vmem:[#allocation5 + $0x40] sm:$0xff]  ;;  %v349_v11 = vld [vmem:[#allocation5 + $0x28] sm:$0xff]  ;;  %s611_s3 = ssub.s32 (%p1393_p10), 3, %s738_s1 }
  0x63   : > { %787 = vmatpush3.msra.mxu0 %v358_v1  ;;  %v350_v10 = vld [vmem:[#allocation5 + $0x30] sm:$0xff]  ;;  %v348_v12 = vld [vmem:[#allocation5 + $0x20] sm:$0xff]  ;;  %v347_v13 = vld [vmem:[#allocation5 + $0x18] sm:$0xff]  ;;  %p612_p1 = scmp.lt.s32.totalorder (%p1393_p10), %s611_s3, 2 }
  0x64   : > { %788 = vmatprep.subr.mxu0 %v357_v2  ;;  %v346_v14 = vld [vmem:[#allocation5 + $0x10] sm:$0xff]  ;;  %v345_v15 = vld [vmem:[#allocation5 + $0x8] sm:$0xff]  ;;  %v344_v16 = vld [vmem:[#allocation5] sm:$0xff] }
  0x65   : > { %789 = vmatpush3.msra.mxu0 %v357_v2  ;;  %v1290_v17 = vld [vmem:[%s1275_s20 + $0x8] sm:$0xff]  ;;  %v470_v19 = vld [vmem:[#allocation7 + $0x70] sm:$0xff]  ;;  %v468_v21 = vld [vmem:[#allocation7 + $0x60] sm:$0xff] }
  0x66   : > { %790 = vmatprep.subr.mxu0 %v356_v3  ;;  %v471_v18 = vld [vmem:[#allocation7 + $0x78] sm:$0xff]  ;;  %v469_v20 = vld [vmem:[#allocation7 + $0x68] sm:$0xff]  ;;  %v466_v23 = vld [vmem:[#allocation7 + $0x50] sm:$0xff] }
  0x67   : > { %791 = vmatpush3.msra.mxu0 %v356_v3  ;;  %819 = vmatprep.subr.mxu1 %v471_v18  ;;  %v467_v22 = vld [vmem:[#allocation7 + $0x58] sm:$0xff]  ;;  %v465_v24 = vld [vmem:[#allocation7 + $0x48] sm:$0xff]  ;;  %v464_v25 = vld [vmem:[#allocation7 + $0x40] sm:$0xff] }
  0x68   : > { %792 = vmatprep.subr.mxu0 %v355_v5  ;;  %820 = vmatpush3.msra.mxu1 %v471_v18  ;;  %v463_v26 = vld [vmem:[#allocation7 + $0x38] sm:$0xff]  ;;  %v462_v27 = vld [vmem:[#allocation7 + $0x30] sm:$0xff]  ;;  %v461_v28 = vld [vmem:[#allocation7 + $0x28] sm:$0xff] }
  0x69   : > { %793 = vmatpush3.msra.mxu0 %v355_v5  ;;  %821 = vmatprep.subr.mxu1 %v470_v19  ;;  %v460_v29 = vld [vmem:[#allocation7 + $0x20] sm:$0xff]  ;;  %v459_v30 = vld [vmem:[#allocation7 + $0x18] sm:$0xff]  ;;  %v458_v31 = vld [vmem:[#allocation7 + $0x10] sm:$0xff] }
  0x6a   : > { %794 = vmatprep.subr.mxu0 %v354_v6  ;;  %822 = vmatpush3.msra.mxu1 %v470_v19  ;;  %v457_v32 = vld [vmem:[#allocation7 + $0x8] sm:$0xff]  ;;  %v456_v33 = vld [vmem:[#allocation7] sm:$0xff] }
  0x6b   : > { %795 = vmatpush3.msra.mxu0 %v354_v6  ;;  %823 = vmatprep.subr.mxu1 %v469_v20  ;;  %v731_v34 = vld [vmem:[%s1372_s2] ss:$0 sm:$0xff] }
  0x6c   : > { %796 = vmatprep.subr.mxu0 %v353_v7  ;;  %824 = vmatpush3.msra.mxu1 %v469_v20  ;;  %v734_v50 = vld [vmem:[%s1374_s4] ss:$0 sm:$0xff] }
  0x6d   : > { %797 = vmatpush3.msra.mxu0 %v353_v7  ;;  %825 = vmatprep.subr.mxu1 %v468_v21 }
  0x6e   : > { %798 = vmatprep.subr.mxu0 %v352_v8  ;;  %826 = vmatpush3.msra.mxu1 %v468_v21 }
  0x6f   : > { %799 = vmatpush3.msra.mxu0 %v352_v8  ;;  %827 = vmatprep.subr.mxu1 %v467_v22 }
  0x70   : > { %800 = vmatprep.subr.mxu0 %v351_v9  ;;  %828 = vmatpush3.msra.mxu1 %v467_v22 }
  0x71   : > { %801 = vmatpush3.msra.mxu0 %v351_v9  ;;  %829 = vmatprep.subr.mxu1 %v466_v23  ;;  %v735_v9 = vld [vmem:[%s1375_s5] ss:$0 sm:$0xff] }
  0x72   : > { %802 = vmatprep.subr.mxu0 %v350_v10  ;;  %830 = vmatpush3.msra.mxu1 %v466_v23 }
  0x73   : > { %803 = vmatpush3.msra.mxu0 %v350_v10  ;;  %831 = vmatprep.subr.mxu1 %v465_v24 }
  0x74   : > { %804 = vmatprep.subr.mxu0 %v349_v11  ;;  %832 = vmatpush3.msra.mxu1 %v465_v24 }
  0x75   : > { %805 = vmatpush3.msra.mxu0 %v349_v11  ;;  %833 = vmatprep.subr.mxu1 %v464_v25  ;;  %v736_v11 = vld [vmem:[%s1376_s6] ss:$0 sm:$0xff] }
  0x76   : > { %806 = vmatprep.subr.mxu0 %v348_v12  ;;  %834 = vmatpush3.msra.mxu1 %v464_v25 }
  0x77   : > { %807 = vmatpush3.msra.mxu0 %v348_v12  ;;  %835 = vmatprep.subr.mxu1 %v463_v26 }
  0x78   : > { %808 = vmatprep.subr.mxu0 %v347_v13  ;;  %836 = vmatpush3.msra.mxu1 %v463_v26 }
  0x79   : > { %809 = vmatpush3.msra.mxu0 %v347_v13  ;;  %837 = vmatprep.subr.mxu1 %v462_v27 }
  0x7a   : > { %810 = vmatprep.subr.mxu0 %v346_v14  ;;  %838 = vmatpush3.msra.mxu1 %v462_v27 }
  0x7b   : > { %811 = vmatpush3.msra.mxu0 %v346_v14  ;;  %839 = vmatprep.subr.mxu1 %v461_v28 }
  0x7c   : > { %812 = vmatprep.subr.mxu0 %v345_v15  ;;  %840 = vmatpush3.msra.mxu1 %v461_v28 }
  0x7d   : > { %813 = vmatpush3.msra.mxu0 %v345_v15  ;;  %841 = vmatprep.subr.mxu1 %v460_v29 }
  0x7e   : > { %814 = vmatprep.subr.mxu0 %v344_v16  ;;  %842 = vmatpush3.msra.mxu1 %v460_v29 }
  0x7f   : > { %815 = vmatpush3.msra.mxu0 %v344_v16  ;;  %843 = vmatprep.subr.mxu1 %v459_v30 }
  0x80   : > { %817 = vmatmul.mubr.f32.vlgmr.msra.gmra.mxu0 %v1290_v17  ;;  %844 = vmatpush3.msra.mxu1 %v459_v30 }
  0x81   : > { %845 = vmatprep.subr.mxu1 %v458_v31 }
  0x82   : > { %846 = vmatpush3.msra.mxu1 %v458_v31 }
  0x83   : > { %847 = vmatprep.subr.mxu1 %v457_v32 }
  0x84   : > { %848 = vmatpush3.msra.mxu1 %v457_v32 }
  0x85   : > { %849 = vmatprep.subr.mxu1 %v456_v33 }
  0x86   : > { %850 = vmatpush3.msra.mxu1 %v456_v33 }
 0x140   : > { %v818_v35 = vpop.f32.mrf.mxu0 }
 0x141   : > { %v439_v36 = vadd.f32 %v818_v35, %v731_v34 }
 0x142   : > { %v433_v37 = vpop.f32.mrf.mxu0 }
 0x143   : > { %v733_v38 = vmul.f32 -1.442695, %v439_v36  ;;  %v434_v39 = vadd.f32 %v731_v34, %v433_v37 }
 0x145   : > { %920 = vpow2.f32 %v733_v38  ;;  %v732_v40 = vmul.f32 -1.442695, %v434_v39 }
 0x147   : > { %922 = vpow2.f32 %v732_v40 }
 0x152   : > { %v921_v41 = vpop.eup %920 }
 0x153   : > { %v449_v42 = vadd.f32 1.0, %v921_v41 }
 0x154   : > { %v923_v43 = vpop.eup %922 }
 0x155   : > { %v448_v44 = vadd.f32 1.0, %v923_v43  ;;  %924 = vrcp.f32 %v449_v42 }
 0x157   : > { %926 = vrcp.f32 %v448_v44 }
 0x162   : > { %v925_v45 = vpop.eup %924 }
 0x163   : > { %v455_v48 = vmul.f32 %v925_v45, %v439_v36 }
 0x164   : > { %v927_v46 = vpop.eup %926 }
 0x165   : > { %v454_v47 = vmul.f32 %v927_v46, %v434_v39 }
 0x167   : > { %851 = vmatprep.mubr.f32.mxu1 %v454_v47 }
 0x168   : > { %852 = vmatmul.mubr.f32.vlgmr.msra.gmra.mxu1 %v455_v48 }
 0x228   : > { %v853_v49 = vpop.f32.mrf.mxu1 }
 0x229   : > { %v551_v53 = vadd.f32 %v853_v49, %v734_v50 }
 0x22a   : > { %v545_v51 = vpop.f32.mrf.mxu1 }
 0x22b   : > { %v546_v52 = vadd.f32 %v734_v50, %v545_v51  ;;  %v559_v55 = vmul.f32 %v551_v53, %v551_v53 }
 0x22d   : > { %554 = vadd.xlane.f32.xlu0 %v546_v52  ;;  %v558_v54 = vmul.f32 %v546_v52, %v546_v52 }
 0x22f   : > { %560 = vadd.xlane.f32.xlu1 %v558_v54 }
 0x231   : > { %556 = vadd.xlane.f32.xlu0 %v551_v53 }
 0x233   : > { %562 = vadd.xlane.f32.xlu1 %v559_v55 }
 0x2b6   : > { %v555_v56 = vpop.xlane.xlu0 %554 }
 0x2b7   : > { %v564_v57 = vmul.f32 0.0078125, %v555_v56 }
 0x2b8   : > { %v561_v58 = vpop.xlane.xlu1 %560 }
 0x2b9   : > { %v568_v59 = vmul.f32 %v564_v57, %v564_v57  ;;  %v566_v60 = vmul.f32 0.0078125, %v561_v58  ;;  %v576_v7 = vsub.f32 %v546_v52, %v564_v57 }
 0x2ba   : > { %v557_v61 = vpop.xlane.xlu0 %556 }
 0x2bb   : > { %v570_v62 = vsub.f32 %v566_v60, %v568_v59  ;;  %v565_v63 = vmul.f32 0.0078125, %v557_v61 }
 0x2bc   : > { %v563_v0 = vpop.xlane.xlu1 %562 }
 0x2bd   : > { %v572_v1 = vadd.f32 1e-05, %v570_v62  ;;  %v569_v2 = vmul.f32 %v565_v63, %v565_v63  ;;  %v567_v3 = vmul.f32 0.0078125, %v563_v0  ;;  %v577_v13 = vsub.f32 %v551_v53, %v565_v63 }
 0x2bf   : > { %928 = vrsqrt.f32 %v572_v1  ;;  %v571_v5 = vsub.f32 %v567_v3, %v569_v2 }
 0x2c1   : > { %v573_v6 = vadd.f32 1e-05, %v571_v5 }
 0x2c3   : > { %930 = vrsqrt.f32 %v573_v6 }
 0x2cc   : > { %v929_v8 = vpop.eup %928 }
 0x2cd   : > { %v578_v10 = vmul.f32 %v929_v8, %v576_v7 }
 0x2cf   : > { %v587_v12 = vmul.f32 %v735_v9, %v578_v10 }
 0x2d0   : > { %v931_v14 = vpop.eup %930 }
 0x2d1   : > { %v596_v15 = vadd.f32 %v736_v11, %v587_v12  ;;  %v579_v16 = vmul.f32 %v931_v14, %v577_v13 }
 0x2d3   : > { %v598_v18 = vadd.f32 %v596_v15, %v1286_v4  ;;  %v588_v19 = vmul.f32 %v735_v9, %v579_v16 }
 0x2d5   : > { %600 = vst [vmem:[%s331_s9] sm:$0xff] %v598_v18  ;;  %v597_v20 = vadd.f32 %v736_v11, %v588_v19  ;;  %609 = sbr.rel (!%p1393_p10) target bundleno = 757 (0x2f5), region = 64 }
 0x2d7   : > { %v599_v21 = vadd.f32 %v597_v20, %v1290_v17 }
 0x2d9   : > { %601 = vst [vmem:[%s331_s9 + $0x8] sm:$0xff] %v599_v21 }
 0x2da   : > { %s1402_s3 = smov (!%p612_p1, %s611_s3), 2 }
 0x2db   : > { %s1313_s8 = sshll.u32 %s1402_s3, 7 }
 0x2dc   : > { %s616_s20 = ssub.s32 256, %s1313_s8 }
 0x2dd   : > { %617 = vsyncadd %s603_s16, %s616_s20  ;;  %p740_p3 = scmp.ne.s32.totalorder %s1313_s8, 0  ;;  %s747_s29 = sshll.u32 %s1151_s28, 8 }
 0x2de   : > { %s1323_s15 = scalar_lea.hbm %s1377_s7, %s747_s29  ;;  %s622_s18 = sshll.u32 %s331_s9, 4  ;;  %s1325_s18 = int_to_ptr.vmem [resolvable:$true] %s622_s18 }
 0x2df   : > { %s1010_s22 = scalar_lea.vmem %s1325_s18, %s1313_s8  ;;  %s1087_s19 = smov [#allocation8]  }
 0x2e0   : > { %p1011_p7 = scmp.ne.s32.totalorder %s1325_s18, %s1010_s22  ;;  %s1014_s21 = sshll.u32 %s1087_s19, 4  ;;  %s1015_s21 = int_to_ptr.vmem [resolvable:$false] %s1014_s21 }
 0x2e1   : > { %s1016_s28 = scalar_lea.vmem %s1015_s21, 512  ;;  %p1017_p4 = scmp.lt.s32.totalorder %s1325_s18, %s1015_s21 }
 0x2e2   : > { %p1012_p9 = pnand %p1011_p7, %p740_p3  ;;  %p1018_p6 = scmp.lt.s32.totalorder %s1016_s28, %s1010_s22 }
 0x2e4   : > { %p1013_p12 = pneg %p1012_p9  ;;  %p1019_p11 = por %p1018_p6, %p1017_p4 }
 0x2e6   : > { %p1020_p0 = pnand %p1019_p11, %p1013_p12 }
 0x2e8   : > { %1023 = shalt.err (!%p1020_p0)
}
 0x2e9   : > { %s1024_s23 = scalar_lea.hbm %s1323_s15, %s1313_s8  ;;  %s1028_s1 = scalar_lea.hbm %s1377_s7, 384 }
 0x2ea   : > { %p1025_p2 = scmp.ne.s32.totalorder %s1323_s15, %s1024_s23  ;;  %p1029_p10 = scmp.lt.s32.totalorder %s1323_s15, %s1377_s7 }
 0x2eb   : > { %p1030_p1 = scmp.lt.s32.totalorder %s1028_s1, %s1024_s23 }
 0x2ec   : > { %p1026_p5 = pnand %p1025_p2, %p740_p3 }
 0x2ed   : > { %p1031_p7 = por %p1030_p1, %p1029_p10 }
 0x2ee   : > { %p1027_p13 = pneg %p1026_p5 }
 0x2f0   : > { %p1032_p9 = pnand %p1031_p7, %p1027_p13 }
 0x2f2   : > { %1035 = shalt.err (!%p1032_p9)
}
 0x2f3   : > { %s1088_s29 = smov 128   ;;  %s1089_s13 = smov 8  }
 0x2f4   : > { %628 = dma.vmem_to_hbm [thread:$0]  (%p740_p3), %s1325_s18, %s1313_s8, %s1323_s15, %s603_s16, %s1088_s29, %s1088_s29, %s1089_s13  }
 0x2f5 PF: > { %s637_s12 = sand.u32 1, %s1066_s24   ;;  %p1394_p12 = scmp.ne.s32.totalorder %s1385_s14, 0 }
 0x2f6   : > { %s638_s22 = scalar_lea.sflag [#allocation4], %s637_s12 }
 0x2f7   : > { %p872_p4 = pnand %p718_p8, %p1394_p12 }
 0x2f9   : > { %p873_p6 = pneg %p872_p4 }
 0x2fb   : > { %1061 = dma.done.wait (%p873_p6), %s638_s22, 256  }
 0x2fc   : > { %1063 = vsyncadd (%p873_p6), %s638_s22, 4294967040  ;;  %p21_p11 = scmp.ge.s32.totalorder %s1155_s30, 4   ;;  %s1395_s24 = smov %s1070_s25 }
 0x2fd   : > { %s1396_s25 = smov %s1074_s26  ;;  %s1397_s26 = smov %s1167_s10 }
 0x2fe   : > { %s1398_s27 = smov %s1155_s30  ;;  %23 = sbr.rel (!%p21_p11) target bundleno = 9 (0x9), region = 101 }
 0x303   :  { %643 = vsyncpa [#allocation3], 1 }
 0x304   :  { %645 = vsyncpa [#allocation3 + $0x1], 1 }
 0x305   :  { %646 = vsyncpa [#allocation6], 1 }
 0x306   :  { %647 = vsyncpa [#allocation4], 1 }
 0x307   :  { %649 = vsyncpa [#allocation4 + $0x1], 1 }

</bundles_post_ra>
